<compile_context>
chip_gen: v6e
topology: v6e:2x2x1
jax: 0.10.0
libtpu: 0.0.40
codegen_flags: <defaults>
</compile_context>

<pallas_src>
import jax
import jax.numpy as jnp
from jax.experimental import pallas as pl
from jax.experimental.pallas import tpu as pltpu


def _round_up(x, m):
    return ((x + m - 1) // m) * m


def _cdiv(a, b):
    return (a + b - 1) // b


def _matvec_sigmoid_kernel(x_ref, w_ref, b_ref, o_ref):
    """One batch tile: o[0, :] = sigmoid(x_tile @ w[0] + b).

    x_ref: (TILE_B, In) VMEM  activation tile (streamed / double-buffered)
    w_ref: (8, In)      VMEM  folded weight; row 0 real, rows 1..7 zero padding
    b_ref: (1, 1)       SMEM  folded bias scalar
    o_ref: (1, TILE_B)  VMEM  lane-dense output row
    """
    # (8, In) x (TILE_B, In) contracted on In -> (8, TILE_B) on the MXU.
    # Only row 0 carries real data; rows 1..7 keep the MXU shapes aligned.
    z8 = jax.lax.dot_general(
        w_ref[...], x_ref[...],
        dimension_numbers=(((1,), (1,)), ((), ())),
        preferred_element_type=jnp.float32,
    )
    # Bias-add + sigmoid on fully-populated (8, TILE_B) vregs; padded rows compute
    # sigmoid(bias) and are discarded at the store (no masked elementwise path).
    s = 1.0 / (1.0 + jnp.exp(-(z8 + b_ref[0, 0])))
    o_ref[...] = s[0:1, :].astype(o_ref.dtype)


def neural_net2_forward(x, w1, b1, w2, b2, *, tile_b=None, use_pallas=None):
    """x: (B, In), w1: (In, H), b1: (1, H), w2: (H, 1), b2: (1, 1) -> (B, 1)."""
    B, In = x.shape
    dtype = x.dtype

    # Fold the two affine layers (no intermediate activation):
    #   (x @ w1 + b1) @ w2 + b2 == x @ (w1 @ w2) + (b1 @ w2 + b2)
    w_folded = (w1 @ w2).astype(jnp.float32)                       # (In, 1)
    b_folded = (b1 @ w2 + b2).astype(jnp.float32).reshape(1, 1)    # scalar

    if use_pallas is None:
        use_pallas = B >= 1024  # below this, a pallas_call is pure launch overhead
    if not use_pallas:
        y = jax.nn.sigmoid(x.astype(jnp.float32) @ w_folded + b_folded)
        return y.astype(dtype)

    # Folded weight as an (8, In) LHS tile (row 0 real) in the activation dtype.
    w_lhs = jnp.zeros((8, In), dtype).at[0, :].set(w_folded[:, 0].astype(dtype))

    # --- tile_b selection against an explicit VMEM budget -----------------------
    # In < 128 is lane-padded to 128 inside VMEM, so budget with the padded width.
    in_lanes = max(_round_up(In, 128), 128)
    bytes_per_row = in_lanes * x.dtype.itemsize
    if tile_b is None:
        vmem_budget = 8 * 1024 * 1024          # for the 2x double-buffered x stream
        cap = max(128, (vmem_budget // (2 * bytes_per_row)) // 128 * 128)
        cap = min(cap, 8192)                   # amortizes ~0.35us/step overhead
        half_b = _round_up(max(_cdiv(B, 2), 1), 128)
        tile_b = max(128, min(cap, half_b))    # keep >= 2 grid steps when B allows
    num_tiles = _cdiv(B, tile_b)

    out_row = pl.pallas_call(
        _matvec_sigmoid_kernel,
        out_shape=jax.ShapeDtypeStruct((1, B), dtype),
        grid=(num_tiles,),
        in_specs=[
            pl.BlockSpec((tile_b, In), lambda i: (i, 0)),          # stream x tiles
            pl.BlockSpec((8, In), lambda i: (0, 0)),               # resident folded weight
            pl.BlockSpec(memory_space=pltpu.MemorySpace.SMEM),     # scalar bias in SMEM
        ],
        out_specs=pl.BlockSpec((1, tile_b), lambda i: (0, i)),     # lane-dense store
        compiler_params=pltpu.CompilerParams(
            dimension_semantics=("parallel",),                     # megacore / 2 TCs on v7x
        ),
        cost_estimate=pl.CostEstimate(
            flops=2 * B * In,
            transcendentals=B,
            bytes_accessed=B * In * x.dtype.itemsize + B * dtype.itemsize,
        ),
    )(x, w_lhs, b_folded)

    return out_row[0, :].reshape(B, 1)


def init_params(key, input_size, hidden_size):
    """Deterministic init mimicking torch.nn.Linear (uniform +/- 1/sqrt(fan_in))."""
    k1, k2, k3, k4 = jax.random.split(key, 4)
    bound1 = 1.0 / jnp.sqrt(jnp.float32(input_size))
    bound2 = 1.0 / jnp.sqrt(jnp.float32(hidden_size))
    w1 = jax.random.uniform(k1, (input_size, hidden_size), jnp.float32, -bound1, bound1)
    b1 = jax.random.uniform(k2, (1, hidden_size), jnp.float32, -bound1, bound1)
    w2 = jax.random.uniform(k3, (hidden_size, 1), jnp.float32, -bound2, bound2)
    b2 = jax.random.uniform(k4, (1, 1), jnp.float32, -bound2, bound2)
    return w1, b1, w2, b2


if __name__ == "__main__":
    # Small-but-nontrivial batch so the kernel path runs with 2 grid steps.
    batch = 256
    input_size = 16
    hidden_size = 32

    key = jax.random.PRNGKey(0)
    kx, kp = jax.random.split(key)
    x = jax.random.normal(kx, (batch, input_size), jnp.float32)
    w1, b1, w2, b2 = init_params(kp, input_size, hidden_size)

    # Reference in plain JAX (same semantics as the intended torch forward).
    ref = jax.nn.sigmoid((x @ w1 + b1) @ w2 + b2)

    # Force the Pallas path (the auto-dispatch would use fused XLA at this size).
    out = jax.block_until_ready(
        neural_net2_forward(x, w1, b1, w2, b2, use_pallas=True)
    )
    assert out.shape == (batch, 1)
    assert jnp.allclose(out, ref, atol=1e-4, rtol=1e-4), float(jnp.max(jnp.abs(out - ref)))

    # Also exercise the small-batch XLA fallback for a few rows.
    out_small = jax.block_until_ready(
        neural_net2_forward(x[:8], w1, b1, w2, b2)
    )
    assert jnp.allclose(out_small, ref[:8], atol=1e-4, rtol=1e-4)

    print("KERNEL_OK")
</pallas_src>

<mosaic_0001>
module attributes {stable_mosaic.version = 11 : i64} {
  func.func @_matvec_sigmoid_kernel(%arg0: i32, %arg1: memref<128x16xf32, #tpu.memory_space<vmem>>, %arg2: memref<8x16xf32, #tpu.memory_space<vmem>>, %arg3: memref<1x1xf32, #tpu.memory_space<smem>>, %arg4: memref<1x128xf32, #tpu.memory_space<vmem>>) attributes {dimension_semantics = [#tpu.dimension_semantics<parallel>], iteration_bounds = array<i64: 2>, scalar_prefetch = 0 : i64, scratch_operands = 0 : i64, tpu.core_type = #tpu.core_type<tc>, window_params = [{transform_indices = @transform_0, window_bounds = array<i64: 128, 16>}, {pipeline_mode = #tpu.pipeline_mode<synchronous>, transform_indices = @transform_1, window_bounds = array<i64: 8, 16>}, {transform_indices = @transform_2, window_bounds = array<i64: 1, 1>}, {transform_indices = @transform_3, window_bounds = array<i64: 1, 128>}]} {
    %c0 = arith.constant 0 : index
    %c0_0 = arith.constant 0 : index
    %0 = vector.load %arg2[%c0, %c0_0] : memref<8x16xf32, #tpu.memory_space<vmem>>, vector<8x16xf32>
    %c0_1 = arith.constant 0 : index
    %c0_2 = arith.constant 0 : index
    %1 = vector.load %arg1[%c0_1, %c0_2] : memref<128x16xf32, #tpu.memory_space<vmem>>, vector<128x16xf32>
    %cst = arith.constant dense<0.000000e+00> : vector<8x128xf32>
    %2 = tpu.matmul %0, %1, %cst {dimension_numbers = #tpu.dot_dimension_numbers<[1], [1], [0], [0], [0, 0, 1, 0], [], []>} : vector<8x16xf32>, vector<128x16xf32>, vector<8x128xf32> -> vector<8x128xf32>
    %c0_3 = arith.constant 0 : index
    %c0_4 = arith.constant 0 : index
    %3 = memref.load %arg3[%c0_3, %c0_4] : memref<1x1xf32, #tpu.memory_space<smem>>
    %4 = vector.broadcast %3 : f32 to vector<8x128xf32>
    %5 = arith.addf %2, %4 : vector<8x128xf32>
    %cst_5 = arith.constant 0.000000e+00 : f32
    %6 = vector.broadcast %cst_5 : f32 to vector<8x128xf32>
    %7 = arith.subf %6, %5 : vector<8x128xf32>
    %8 = math.exp %7 : vector<8x128xf32>
    %cst_6 = arith.constant 1.000000e+00 : f32
    %9 = vector.broadcast %cst_6 : f32 to vector<8x128xf32>
    %10 = arith.addf %9, %8 : vector<8x128xf32>
    %cst_7 = arith.constant 1.000000e+00 : f32
    %11 = vector.broadcast %cst_7 : f32 to vector<8x128xf32>
    %12 = arith.divf %11, %10 : vector<8x128xf32>
    %13 = vector.extract_strided_slice %12 {offsets = [0, 0], sizes = [1, 128], strides = [1, 1]} : vector<8x128xf32> to vector<1x128xf32>
    %c0_8 = arith.constant 0 : index
    %c0_9 = arith.constant 0 : index
    %14 = vector.load %arg4[%c0_8, %c0_9] : memref<1x128xf32, #tpu.memory_space<vmem>>, vector<1x128xf32>
    tpu.vector_store %arg4[%c0_8, %c0_9], %13 {strides = array<i32>} : memref<1x128xf32, #tpu.memory_space<vmem>>, vector<1x128xf32>,
    return
  }
  func.func @transform_0(%arg0: i32) -> (i32, i32) {
    %c0_i32 = arith.constant 0 : i32
    %c0_i32_0 = arith.constant 0 : i32
    return %arg0, %c0_i32 : i32, i32
  }
  func.func @transform_1(%arg0: i32) -> (i32, i32) {
    %c0_i32 = arith.constant 0 : i32
    %c0_i32_0 = arith.constant 0 : i32
    %c0_i32_1 = arith.constant 0 : i32
    return %c0_i32, %c0_i32_0 : i32, i32
  }
  func.func @transform_2(%arg0: i32) -> (i32, i32) {
    %c0_i32 = arith.constant 0 : i32
    %c0_i32_0 = arith.constant 0 : i32
    %c0_i32_1 = arith.constant 0 : i32
    return %c0_i32, %c0_i32_0 : i32, i32
  }
  func.func @transform_3(%arg0: i32) -> (i32, i32) {
    %c0_i32 = arith.constant 0 : i32
    %c0_i32_0 = arith.constant 0 : i32
    return %c0_i32, %arg0 : i32, i32
  }
}

</mosaic_0001>

<bundles_post_ra>
// kernel: tpu_custom_call.1
= control target key start
LH: loop header
LB: loop body
LE: loop exit
PB: predicated region body
PF: predicated region fallthrough
CT: control target
= control target key end

     0   :  { %s728_s0 = inlined_call_operand.vmem [shape: f32[256,16], index: 0, kind: input, shape index: {}]   ;;  %s729_s1 = inlined_call_operand.vmem [shape: f32[8,16], index: 1, kind: input, shape index: {}]   ;;  %s730_s2 = inlined_call_operand.<no memory space> [shape: f32[1,1], index: 2, kind: input, shape index: {}]   ;;  %s731_s3 = inlined_call_operand.hbm [shape: f32[1,256], index: 3, kind: output, shape index: {}]  }
   0x1   :  { %8 = sst [smem:[#allocation2]] %s730_s2 }
   0x2   :  { %9 = vsyncpa [#allocation4], 0 }
   0x3   :  { %11 = vsyncpa [#allocation4 + $0x1], 0  ;;  %s598_s14 = smov 0   ;;  %s600_s15 = smov 0  }
   0x4   :  { %s602_s16 = smov 0   ;;  %s604_s17 = smov 0  }
   0x5 LB: > { %s386_s2 = sadd.s32 4294967295, %s570_s17   ;;  %s387_s18 = sadd.s32 4294967294, %s570_s17   ;;  %s570_s17 = sphi %s604_s17, %s737_s17   ;;  %s566_s16 = sphi %s602_s16, %s736_s16   ;;  %s562_s15 = sphi %s600_s15, %s735_s15   ;;  %s558_s14 = sphi %s598_s14, %s734_s14  }
   0x6   : > { %s621_s19 = sadd.s32 1, %s570_s17   ;;  %s92_s20 = sadd.s32 1, %s566_s16 }
   0x7   : > { %s89_s21 = ssub.s32 %s570_s17, %s621_s19  ;;  %p102_p0 = scmp.ne.s32.totalorder %s566_s16, %s562_s15 }
   0x8   : > { %p90_p1 = scmp.eq.s32.totalorder %s89_s21, 0  ;;  %p103_p2 = scmp.eq.s32.totalorder %s386_s2, 1 }
   0x9   : > { %p108_p3 = scmp.ne.s32.totalorder %s562_s15, %s558_s14  ;;  %p109_p4 = scmp.eq.s32.totalorder %s387_s18, 1 }
   0xa   : > { %s631_s22 = scalar_select %p90_p1, %s566_s16, %s92_s20  }
   0xb   : > { %p633_p5 = por %p103_p2, %p102_p0  ;;  %p637_p6 = por %p109_p4, %p108_p3 }
   0xc   : > { %p390_p7 = scmp.ge.s32.totalorder %s570_s17, 1  ;;  %p142_p8 = scmp.lt.s32.totalorder %s570_s17, 3 }
   0xe   : > { %p143_p9 = pnand %p390_p7, %p142_p8 }
   0xf   : > { %s643_s25 = sshll.u32 (!%p143_p9), %s386_s2, 4  ;;  %s188_s6 = sld [smem:[#allocation2]] (!%p143_p9) }
  0x10   : > { %146 = sbr.rel (%p143_p9) target bundleno = 331 (0x14b), region = 32  ;;  %p166_p10 = scmp.lt.s32.totalorder (!%p143_p9), %s643_s25, 31 }
  0x11   : > { %s163_s7 = sand.u32 (!%p143_p9), 1, %s562_s15   ;;  %s693_s12 = scalar_lea.hbm (!%p143_p9), %s731_s3, %s643_s25 }
  0x12   : > { %s164_s8 = scalar_lea.vmem (!%p143_p9), [#allocation3], %s163_s7  ;;  %s320_s13 = scalar_lea.sflag (!%p143_p9), [#allocation4], %s163_s7 }
  0x13   : > { %s332_s9 = sshll.u32 (!%p143_p9), %s164_s8, 4  ;;  %s574_s18 = smov (!%p143_p9), [#allocation3]   ;;  %s333_s9 = int_to_ptr.vmem [resolvable:$true] %s332_s9 }
  0x14   : > { %s510_s2 = scalar_lea.vmem (!%p143_p9), %s333_s9, 16  ;;  %s514_s20 = sshll.u32 (!%p143_p9), %s574_s18, 4  ;;  %s515_s20 = int_to_ptr.vmem [resolvable:$false] %s514_s20 }
  0x15   : > { %v572_v0 = vmov 0.0   ;;  %vm573_vm0 = vmmov 0   ;;  %s167_s26 = scalar_select %p166_p10, %s643_s25, 31  ;;  %vm190_vm1 = vcmask 130048   ;;  %v171_v17 = vld [vmem:[%s729_s1] sm:$0xff]  ;;  %v189_v18 = vstv %s188_s6 }
  0x16   : > { %430 = vmatprep.subr.mxu0 %v572_v0  ;;  %462 = vmatprep.mubr.msk.f32.mxu0 %vm573_vm0, %v572_v0  ;;  %p511_p11 = scmp.ne.s32.totalorder %s333_s9, %s510_s2  ;;  %s516_s21 = scalar_lea.vmem %s515_s20, 32 }
  0x17   : > { %s392_s27 = sshll.u32 %s167_s26, 3  ;;  %p517_p0 = scmp.lt.s32.totalorder %s333_s9, %s515_s20 }
  0x18   : > { %s650_s30 = scalar_lea.vmem %s728_s0, %s392_s27  ;;  %p512_p12 = pnand %p511_p11, %p633_p5 }
  0x19   : > { %v187_v1 = vld [vmem:[%s650_s30 + $0x78] sm:$0xff]  ;;  %v186_v2 = vld [vmem:[%s650_s30 + $0x70] sm:$0xff]  ;;  %v185_v3 = vld [vmem:[%s650_s30 + $0x68] sm:$0xff]  ;;  %p518_p1 = scmp.lt.s32.totalorder %s516_s21, %s510_s2 }
  0x1a   : > { %431 = vmatpush3.xpose.msk.msra.mxu0 %vm190_vm1, %v187_v1  ;;  %v184_v4 = vld [vmem:[%s650_s30 + $0x60] sm:$0xff]  ;;  %v183_v5 = vld [vmem:[%s650_s30 + $0x58] sm:$0xff]  ;;  %v182_v6 = vld [vmem:[%s650_s30 + $0x50] sm:$0xff]  ;;  %p513_p13 = pneg %p512_p12 }
  0x1b   : > { %432 = vmatprep.subr.mxu0 %v572_v0  ;;  %v181_v7 = vld [vmem:[%s650_s30 + $0x48] sm:$0xff]  ;;  %v180_v8 = vld [vmem:[%s650_s30 + $0x40] sm:$0xff]  ;;  %v179_v9 = vld [vmem:[%s650_s30 + $0x38] sm:$0xff]  ;;  %p519_p2 = por %p518_p1, %p517_p0 }
  0x1c   : > { %v178_v10 = vld [vmem:[%s650_s30 + $0x30] sm:$0xff]  ;;  %v177_v11 = vld [vmem:[%s650_s30 + $0x28] sm:$0xff]  ;;  %v176_v12 = vld [vmem:[%s650_s30 + $0x20] sm:$0xff] }
  0x1d   : > { %v175_v13 = vld [vmem:[%s650_s30 + $0x18] sm:$0xff]  ;;  %v174_v14 = vld [vmem:[%s650_s30 + $0x10] sm:$0xff]  ;;  %v173_v15 = vld [vmem:[%s650_s30 + $0x8] sm:$0xff]  ;;  %p520_p3 = pnand %p519_p2, %p513_p13 }
  0x1e   : > { %433 = vmatpush3.xpose.msk.msra.mxu0 %vm190_vm1, %v186_v2  ;;  %v172_v16 = vld [vmem:[%s650_s30] sm:$0xff] }
  0x1f   : > { %434 = vmatprep.subr.mxu0 %v572_v0 }
  0x22   : > { %435 = vmatpush3.xpose.msk.msra.mxu0 %vm190_vm1, %v185_v3 }
  0x23   : > { %436 = vmatprep.subr.mxu0 %v572_v0 }
  0x26   : > { %437 = vmatpush3.xpose.msk.msra.mxu0 %vm190_vm1, %v184_v4 }
  0x27   : > { %438 = vmatprep.subr.mxu0 %v572_v0 }
  0x2a   : > { %439 = vmatpush3.xpose.msk.msra.mxu0 %vm190_vm1, %v183_v5 }
  0x2b   : > { %440 = vmatprep.subr.mxu0 %v572_v0 }
  0x2e   : > { %441 = vmatpush3.xpose.msk.msra.mxu0 %vm190_vm1, %v182_v6 }
  0x2f   : > { %442 = vmatprep.subr.mxu0 %v572_v0 }
  0x32   : > { %443 = vmatpush3.xpose.msk.msra.mxu0 %vm190_vm1, %v181_v7 }
  0x33   : > { %444 = vmatprep.subr.mxu0 %v572_v0 }
  0x36   : > { %445 = vmatpush3.xpose.msk.msra.mxu0 %vm190_vm1, %v180_v8 }
  0x37   : > { %446 = vmatprep.subr.mxu0 %v572_v0 }
  0x3a   : > { %447 = vmatpush3.xpose.msk.msra.mxu0 %vm190_vm1, %v179_v9 }
  0x3b   : > { %448 = vmatprep.subr.mxu0 %v572_v0 }
  0x3e   : > { %449 = vmatpush3.xpose.msk.msra.mxu0 %vm190_vm1, %v178_v10 }
  0x3f   : > { %450 = vmatprep.subr.mxu0 %v572_v0 }
  0x42   : > { %451 = vmatpush3.xpose.msk.msra.mxu0 %vm190_vm1, %v177_v11 }
  0x43   : > { %452 = vmatprep.subr.mxu0 %v572_v0 }
  0x46   : > { %453 = vmatpush3.xpose.msk.msra.mxu0 %vm190_vm1, %v176_v12 }
  0x47   : > { %454 = vmatprep.subr.mxu0 %v572_v0 }
  0x4a   : > { %455 = vmatpush3.xpose.msk.msra.mxu0 %vm190_vm1, %v175_v13 }
  0x4b   : > { %456 = vmatprep.subr.mxu0 %v572_v0 }
  0x4e   : > { %457 = vmatpush3.xpose.msk.msra.mxu0 %vm190_vm1, %v174_v14 }
  0x4f   : > { %458 = vmatprep.subr.mxu0 %v572_v0 }
  0x52   : > { %459 = vmatpush3.xpose.msk.msra.mxu0 %vm190_vm1, %v173_v15 }
  0x53   : > { %460 = vmatprep.subr.mxu0 %v572_v0 }
  0x56   : > { %461 = vmatpush3.xpose.msk.msra.mxu0 %vm190_vm1, %v172_v16 }
  0x59   : > { %463 = vmatmul.mubr.msk.f32.vlgmr.msra.gmra.mxu0 %vm190_vm1, %v171_v17 }
 0x119   : > { %v308_v19 = vpop.f32.mrf.mxu0 }
 0x11a   : > { %v309_v20 = vadd.f32 %v308_v19, %v189_v18 }
 0x11b   : > { %v464_v21 = vpop.f32.mrf.mxu0 }
 0x11c   : > { %v312_v22 = vsub.f32 0.0, %v309_v20 }
 0x11e   : > { %v313_v23 = vmul.f32 1.442695, %v312_v22 }
 0x120   : > { %506 = vpow2.f32 %v313_v23 }
 0x12d   : > { %v507_v24 = vpop.eup %506 }
 0x12e   : > { %v315_v25 = vadd.f32 1.0, %v507_v24 }
 0x130   : > { %508 = vrcp.f32 %v315_v25 }
 0x13d   : > { %v509_v26 = vpop.eup %508 }
 0x13e   : > { %318 = vst [vmem:[%s164_s8] sm:$0x1] %v509_v26 }
 0x13f   : > { %523 = shalt.err (!%p520_p3)
}
 0x140   : > { %s524_s25 = scalar_lea.hbm %s693_s12, 16  ;;  %s528_s28 = scalar_lea.hbm %s731_s3, 32 }
 0x141   : > { %p525_p4 = scmp.ne.s32.totalorder %s693_s12, %s524_s25  ;;  %p529_p9 = scmp.lt.s32.totalorder %s693_s12, %s731_s3 }
 0x142   : > { %p530_p10 = scmp.lt.s32.totalorder %s528_s28, %s524_s25 }
 0x143   : > { %p526_p7 = pnand %p525_p4, %p633_p5 }
 0x144   : > { %p531_p11 = por %p530_p10, %p529_p9 }
 0x145   : > { %p527_p8 = pneg %p526_p7 }
 0x147   : > { %p532_p12 = pnand %p531_p11, %p527_p8 }
 0x149   : > { %535 = shalt.err (!%p532_p12)
}
 0x14a   : > { %465 = dma.vmem_to_hbm [thread:$0]  (%p633_p5), %s333_s9, 16, %s693_s12, %s320_s13  }
 0x14b PF: > { %p471_p13 = scmp.ge.s32.totalorder %s570_s17, 2  ;;  %s344_s4 = sand.u32 1, %s558_s14  }
 0x14c   : > { %s345_s5 = scalar_lea.sflag [#allocation4], %s344_s4 }
 0x14d   : > { %p468_p0 = pnand %p471_p13, %p637_p6 }
 0x14f   : > { %p469_p1 = pneg %p468_p0 }
 0x151   : > { %553 = dma.done.wait (%p469_p1), %s345_s5, 16  }
 0x152   : > { %555 = vsyncadd (%p469_p1), %s345_s5, 4294967280  ;;  %p14_p2 = scmp.ge.s32.totalorder %s621_s19, 4   ;;  %s734_s14 = smov %s562_s15 }
 0x153   : > { %s735_s15 = smov %s566_s16  ;;  %s736_s16 = smov %s631_s22 }
 0x154   : > { %s737_s17 = smov %s621_s19  ;;  %16 = sbr.rel (!%p14_p2) target bundleno = 5 (0x5), region = 67 }
 0x159   :  { %349 = vsyncpa [#allocation4], 1 }
 0x15a   :  { %351 = vsyncpa [#allocation4 + $0x1], 1 }

</bundles_post_ra>
